<compile_context>
chip_gen: v7x
topology: tpu7x:2x2x1
jax: 0.10.0
libtpu: 0.0.40
codegen_flags: <defaults>
</compile_context>

<pallas_src>
import jax
import jax.numpy as jnp
from jax import lax
from jax.experimental import pallas as pl
from jax.experimental.pallas import tpu as pltpu


def crossformer_kernel(x_ref, z_ref, mask_ref,
                       wq_ref, wk_ref, wv_ref, wo_ref, bo_ref,
                       w1_ref, b1_ref, w2_ref, b2_ref,
                       o_ref, dots_acc):
    """One (batch, n1_tile, n2_tile) grid step.

    dots_acc : (inner, inner) f32 VMEM scratch accumulating K^T V over N2 tiles.
    """
    n2_step = pl.program_id(2)
    n2_last = pl.num_programs(2) - 1

    @pl.when(n2_step == 0)
    def _():
        dots_acc[...] = jnp.zeros_like(dots_acc)

    # ---- K^T V accumulation over the current N2 tile -------------------------
    z = z_ref[0].astype(jnp.float32)                                   # (tn2, D)
    k = jnp.dot(z, wk_ref[...], preferred_element_type=jnp.float32)    # (tn2, inner)
    v = jnp.dot(z, wv_ref[...], preferred_element_type=jnp.float32)    # (tn2, inner)
    # contract over the N2 axis without an explicit transpose
    dots_acc[...] += lax.dot_general(
        k, v, dimension_numbers=(((0,), (0,)), ((), ())),
        preferred_element_type=jnp.float32)                            # (inner, inner)

    # ---- tail: q @ dots, to_out, residual, FFN (only once per (b, n1) tile) --
    @pl.when(n2_step == n2_last)
    def _():
        x = x_ref[0].astype(jnp.float32)                                # (tn1, D)
        q = jnp.dot(x, wq_ref[...], preferred_element_type=jnp.float32)  # (tn1, inner)

        # block-diagonal head mask with the 1/N2 scale folded in (host constant)
        dots = dots_acc[...] * mask_ref[...]                            # (inner, inner)
        attn = jnp.dot(q, dots, preferred_element_type=jnp.float32)     # (tn1, inner)

        # to_out projection (heads > 1 => Linear with bias; Dropout(0) = identity)
        attn_o = jnp.dot(attn, wo_ref[...],
                         preferred_element_type=jnp.float32) + bo_ref[...]

        # residual=True, use_ln=False
        x1 = attn_o + x                                                 # (tn1, D)

        # FeedForward: Linear -> GELU -> Linear (+ residual)
        # TODO(synk): PyTorch nn.GELU defaults to exact erf GELU; tanh approx is
        # used for guaranteed Mosaic lowering (elementwise diff ~1e-3).
        h1 = jnp.dot(x1, w1_ref[...], preferred_element_type=jnp.float32) + b1_ref[...]
        h1 = jax.nn.gelu(h1, approximate=True)
        y = jnp.dot(h1, w2_ref[...], preferred_element_type=jnp.float32) + b2_ref[...]

        o_ref[0] = (y + x1).astype(o_ref.dtype)


def crossformer_forward(x, z, params, *, heads, dim_head,
                        n1_block=None, n2_block=None):
    B, N1, D = x.shape
    _, N2, _ = z.shape
    wq, wk, wv, wo, bo, w1, b1, w2, b2 = params
    inner = heads * dim_head
    mlp_dim = w1.shape[1]

    # One batch element per grid step; tile N1 / N2 at <= 512 rows per step.
    if n1_block is None:
        n1_block = N1 if N1 <= 512 else 512
    if n2_block is None:
        n2_block = N2 if N2 <= 512 else 512
    assert N1 % n1_block == 0 and N2 % n2_block == 0, "sequence dims must tile evenly"

    # Block-diagonal (per-head) mask with the galerkin 1/N2 scale folded in.
    # Built once on the host; scale uses total N2 so N2-tiling stays correct.
    head_ids = jnp.arange(inner, dtype=jnp.int32) // dim_head
    mask = (head_ids[:, None] == head_ids[None, :]).astype(jnp.float32) * (1.0 / N2)

    grid = (B, N1 // n1_block, N2 // n2_block)

    def const_spec(arr):
        nd = arr.ndim
        return pl.BlockSpec(arr.shape, lambda b, i, k, _nd=nd: (0,) * _nd)

    flops = 2 * B * (N1 * D * inner            # q projection
                     + 2 * N2 * D * inner      # k, v projections
                     + N2 * inner * inner      # K^T V
                     + N1 * inner * inner      # q @ dots
                     + N1 * inner * D          # to_out
                     + 2 * N1 * D * mlp_dim)   # FFN
    bytes_accessed = 4 * (x.size + z.size + x.size
                          + sum(int(p.size) for p in params) + mask.size)
    cost = pl.CostEstimate(flops=int(flops),
                           transcendentals=int(B * N1 * mlp_dim),
                           bytes_accessed=int(bytes_accessed))

    return pl.pallas_call(
        crossformer_kernel,
        out_shape=jax.ShapeDtypeStruct((B, N1, D), x.dtype),
        grid=grid,
        in_specs=[
            pl.BlockSpec((1, n1_block, D), lambda b, i, k: (b, i, 0)),   # x (constant in k)
            pl.BlockSpec((1, n2_block, D), lambda b, i, k: (b, k, 0)),   # z (streams over k)
            const_spec(mask),
            const_spec(wq), const_spec(wk), const_spec(wv),
            const_spec(wo), const_spec(bo),
            const_spec(w1), const_spec(b1), const_spec(w2), const_spec(b2),
        ],
        out_specs=pl.BlockSpec((1, n1_block, D), lambda b, i, k: (b, i, 0)),
        scratch_shapes=[pltpu.VMEM((inner, inner), jnp.float32)],
        compiler_params=pltpu.CompilerParams(
            dimension_semantics=("parallel", "parallel", "arbitrary"),
            vmem_limit_bytes=48 * 1024 * 1024),
        cost_estimate=cost,
    )(x, z, mask, wq, wk, wv, wo, bo, w1, b1, w2, b2)


def reference_forward(x, z, params, *, heads, dim_head):
    """Pure-JAX (all-f32) reference mirroring the kernel's math."""
    wq, wk, wv, wo, bo, w1, b1, w2, b2 = params
    B, N1, D = x.shape
    N2 = z.shape[1]
    inner = heads * dim_head

    q = jnp.einsum('bnd,de->bne', x, wq)
    k = jnp.einsum('bnd,de->bne', z, wk)
    v = jnp.einsum('bnd,de->bne', z, wv)

    qh = q.reshape(B, N1, heads, dim_head)
    kh = k.reshape(B, N2, heads, dim_head)
    vh = v.reshape(B, N2, heads, dim_head)

    dots = jnp.einsum('bnhd,bnhe->bhde', kh, vh) * (1.0 / N2)
    out = jnp.einsum('bnhd,bhde->bnhe', qh, dots).reshape(B, N1, inner)

    attn = jnp.einsum('bne,ed->bnd', out, wo) + bo[0]
    x1 = attn + x
    h1 = jax.nn.gelu(jnp.einsum('bnd,dm->bnm', x1, w1) + b1[0], approximate=True)
    y = jnp.einsum('bnm,md->bnd', h1, w2) + b2[0]
    return y + x1


if __name__ == "__main__":
    # Small, CrossFormer-consistent shapes.
    B, N1, N2 = 2, 16, 32
    dim, heads, dim_head, mlp_dim = 32, 4, 8, 64
    inner = heads * dim_head

    key = jax.random.PRNGKey(0)
    ks = jax.random.split(key, 11)

    # Deterministic synthetic parameters (stand-in for orthogonal/xavier init).
    def make_w(k, shape, scale):
        return jax.random.normal(k, shape, jnp.float32) * scale

    wq = make_w(ks[0], (dim, inner), 1.0 / dim_head)
    wk = make_w(ks[1], (dim, inner), 1.0 / dim_head)
    wv = make_w(ks[2], (dim, inner), 1.0 / dim_head)
    wo = make_w(ks[3], (inner, dim), 0.1)
    bo = jax.random.normal(ks[4], (1, dim), jnp.float32) * 0.1
    w1 = make_w(ks[5], (dim, mlp_dim), 0.1)
    b1 = jax.random.normal(ks[6], (1, mlp_dim), jnp.float32) * 0.1
    w2 = make_w(ks[7], (mlp_dim, dim), 0.1)
    b2 = jax.random.normal(ks[8], (1, dim), jnp.float32) * 0.1
    params = (wq, wk, wv, wo, bo, w1, b1, w2, b2)

    x = jax.random.normal(ks[9], (B, N1, dim), jnp.float32)
    z = jax.random.normal(ks[10], (B, N2, dim), jnp.float32)

    out = crossformer_forward(x, z, params, heads=heads, dim_head=dim_head)
    out = jax.block_until_ready(out)

    ref = reference_forward(x, z, params, heads=heads, dim_head=dim_head)
    assert out.shape == (B, N1, dim)
    assert jnp.allclose(out, ref, atol=1e-2, rtol=1e-2), "mismatch vs JAX reference"

    print("KERNEL_OK")
</pallas_src>

<mosaic_0001>
module attributes {stable_mosaic.version = 11 : i64} {
  func.func @crossformer_kernel(%arg0: i32, %arg1: i32, %arg2: i32, %arg3: memref<1x16x32xf32, #tpu.memory_space<vmem>>, %arg4: memref<1x32x32xf32, #tpu.memory_space<vmem>>, %arg5: memref<32x32xf32, #tpu.memory_space<vmem>>, %arg6: memref<32x32xf32, #tpu.memory_space<vmem>>, %arg7: memref<32x32xf32, #tpu.memory_space<vmem>>, %arg8: memref<32x32xf32, #tpu.memory_space<vmem>>, %arg9: memref<32x32xf32, #tpu.memory_space<vmem>>, %arg10: memref<1x32xf32, #tpu.memory_space<vmem>>, %arg11: memref<32x64xf32, #tpu.memory_space<vmem>>, %arg12: memref<1x64xf32, #tpu.memory_space<vmem>>, %arg13: memref<64x32xf32, #tpu.memory_space<vmem>>, %arg14: memref<1x32xf32, #tpu.memory_space<vmem>>, %arg15: memref<1x16x32xf32, #tpu.memory_space<vmem>>, %arg16: memref<32x32xf32, #tpu.memory_space<vmem>>) attributes {dimension_semantics = [#tpu.dimension_semantics<parallel>, #tpu.dimension_semantics<parallel>, #tpu.dimension_semantics<arbitrary>], iteration_bounds = array<i64: 2, 1, 1>, scalar_prefetch = 0 : i64, scratch_operands = 1 : i64, tpu.core_type = #tpu.core_type<tc>, window_params = [{transform_indices = @transform_0, window_bounds = array<i64: 1, 16, 32>}, {transform_indices = @transform_1, window_bounds = array<i64: 1, 32, 32>}, {pipeline_mode = #tpu.pipeline_mode<synchronous>, transform_indices = @transform_2, window_bounds = array<i64: 32, 32>}, {pipeline_mode = #tpu.pipeline_mode<synchronous>, transform_indices = @transform_3, window_bounds = array<i64: 32, 32>}, {pipeline_mode = #tpu.pipeline_mode<synchronous>, transform_indices = @transform_4, window_bounds = array<i64: 32, 32>}, {pipeline_mode = #tpu.pipeline_mode<synchronous>, transform_indices = @transform_5, window_bounds = array<i64: 32, 32>}, {pipeline_mode = #tpu.pipeline_mode<synchronous>, transform_indices = @transform_6, window_bounds = array<i64: 32, 32>}, {pipeline_mode = #tpu.pipeline_mode<synchronous>, transform_indices = @transform_7, window_bounds = array<i64: 1, 32>}, {pipeline_mode = #tpu.pipeline_mode<synchronous>, transform_indices = @transform_8, window_bounds = array<i64: 32, 64>}, {pipeline_mode = #tpu.pipeline_mode<synchronous>, transform_indices = @transform_9, window_bounds = array<i64: 1, 64>}, {pipeline_mode = #tpu.pipeline_mode<synchronous>, transform_indices = @transform_10, window_bounds = array<i64: 64, 32>}, {pipeline_mode = #tpu.pipeline_mode<synchronous>, transform_indices = @transform_11, window_bounds = array<i64: 1, 32>}, {transform_indices = @transform_12, window_bounds = array<i64: 1, 16, 32>}]} {
    %c0_i32 = arith.constant 0 : i32
    %0 = arith.cmpi eq, %arg2, %c0_i32 : i32
    %1 = arith.extui %0 : i1 to i32
    %c0_i32_0 = arith.constant 0 : i32
    %2 = arith.cmpi ne, %1, %c0_i32_0 : i32
    scf.if %2 {
      %cst_15 = arith.constant 0.000000e+00 : f32
      %16 = vector.broadcast %cst_15 : f32 to vector<32x32xf32>
      %c0_16 = arith.constant 0 : index
      %c0_17 = arith.constant 0 : index
      %17 = vector.load %arg16[%c0_16, %c0_17] : memref<32x32xf32, #tpu.memory_space<vmem>>, vector<32x32xf32>
      tpu.vector_store %arg16[%c0_16, %c0_17], %16 {strides = array<i32>} : memref<32x32xf32, #tpu.memory_space<vmem>>, vector<32x32xf32>,
    } else {
    }
    %c0 = arith.constant 0 : index
    %c0_1 = arith.constant 0 : index
    %c0_2 = arith.constant 0 : index
    %3 = vector.load %arg4[%c0, %c0_1, %c0_2] : memref<1x32x32xf32, #tpu.memory_space<vmem>>, vector<1x32x32xf32>
    %4 = vector.shape_cast %3 : vector<1x32x32xf32> to vector<32x32xf32>
    %c0_3 = arith.constant 0 : index
    %c0_4 = arith.constant 0 : index
    %5 = vector.load %arg7[%c0_3, %c0_4] : memref<32x32xf32, #tpu.memory_space<vmem>>, vector<32x32xf32>
    %cst = arith.constant dense<0.000000e+00> : vector<32x32xf32>
    %6 = tpu.matmul %4, %5, %cst {dimension_numbers = #tpu.dot_dimension_numbers<[1], [0], [0], [1], [0, 0, 1, 1], [], []>} : vector<32x32xf32>, vector<32x32xf32>, vector<32x32xf32> -> vector<32x32xf32>
    %c0_5 = arith.constant 0 : index
    %c0_6 = arith.constant 0 : index
    %7 = vector.load %arg8[%c0_5, %c0_6] : memref<32x32xf32, #tpu.memory_space<vmem>>, vector<32x32xf32>
    %cst_7 = arith.constant dense<0.000000e+00> : vector<32x32xf32>
    %8 = tpu.matmul %4, %7, %cst_7 {dimension_numbers = #tpu.dot_dimension_numbers<[1], [0], [0], [1], [0, 0, 1, 1], [], []>} : vector<32x32xf32>, vector<32x32xf32>, vector<32x32xf32> -> vector<32x32xf32>
    %c0_8 = arith.constant 0 : index
    %c0_9 = arith.constant 0 : index
    %9 = vector.load %arg16[%c0_8, %c0_9] : memref<32x32xf32, #tpu.memory_space<vmem>>, vector<32x32xf32>
    %cst_10 = arith.constant dense<0.000000e+00> : vector<32x32xf32>
    %10 = tpu.matmul %6, %8, %cst_10 {dimension_numbers = #tpu.dot_dimension_numbers<[0], [0], [1], [1], [0, 1, 1, 1], [], []>} : vector<32x32xf32>, vector<32x32xf32>, vector<32x32xf32> -> vector<32x32xf32>
    %11 = arith.addf %9, %10 : vector<32x32xf32>
    %c0_11 = arith.constant 0 : index
    %c0_12 = arith.constant 0 : index
    %12 = vector.load %arg16[%c0_11, %c0_12] : memref<32x32xf32, #tpu.memory_space<vmem>>, vector<32x32xf32>
    tpu.vector_store %arg16[%c0_11, %c0_12], %11 {strides = array<i32>} : memref<32x32xf32, #tpu.memory_space<vmem>>, vector<32x32xf32>,
    %c0_i32_13 = arith.constant 0 : i32
    %13 = arith.cmpi eq, %arg2, %c0_i32_13 : i32
    %14 = arith.extui %13 : i1 to i32
    %c0_i32_14 = arith.constant 0 : i32
    %15 = arith.cmpi ne, %14, %c0_i32_14 : i32
    scf.if %15 {
      %c0_15 = arith.constant 0 : index
      %c0_16 = arith.constant 0 : index
      %c0_17 = arith.constant 0 : index
      %16 = vector.load %arg3[%c0_15, %c0_16, %c0_17] : memref<1x16x32xf32, #tpu.memory_space<vmem>>, vector<1x16x32xf32>
      %17 = vector.shape_cast %16 : vector<1x16x32xf32> to vector<16x32xf32>
      %c0_18 = arith.constant 0 : index
      %c0_19 = arith.constant 0 : index
      %18 = vector.load %arg6[%c0_18, %c0_19] : memref<32x32xf32, #tpu.memory_space<vmem>>, vector<32x32xf32>
      %cst_20 = arith.constant dense<0.000000e+00> : vector<16x32xf32>
      %19 = tpu.matmul %17, %18, %cst_20 {dimension_numbers = #tpu.dot_dimension_numbers<[1], [0], [0], [1], [0, 0, 1, 1], [], []>} : vector<16x32xf32>, vector<32x32xf32>, vector<16x32xf32> -> vector<16x32xf32>
      %c0_21 = arith.constant 0 : index
      %c0_22 = arith.constant 0 : index
      %20 = vector.load %arg16[%c0_21, %c0_22] : memref<32x32xf32, #tpu.memory_space<vmem>>, vector<32x32xf32>
      %c0_23 = arith.constant 0 : index
      %c0_24 = arith.constant 0 : index
      %21 = vector.load %arg5[%c0_23, %c0_24] : memref<32x32xf32, #tpu.memory_space<vmem>>, vector<32x32xf32>
      %22 = arith.mulf %20, %21 : vector<32x32xf32>
      %cst_25 = arith.constant dense<0.000000e+00> : vector<16x32xf32>
      %23 = tpu.matmul %19, %22, %cst_25 {dimension_numbers = #tpu.dot_dimension_numbers<[1], [0], [0], [1], [0, 0, 1, 1], [], []>} : vector<16x32xf32>, vector<32x32xf32>, vector<16x32xf32> -> vector<16x32xf32>
      %c0_26 = arith.constant 0 : index
      %c0_27 = arith.constant 0 : index
      %24 = vector.load %arg9[%c0_26, %c0_27] : memref<32x32xf32, #tpu.memory_space<vmem>>, vector<32x32xf32>
      %cst_28 = arith.constant dense<0.000000e+00> : vector<16x32xf32>
      %25 = tpu.matmul %23, %24, %cst_28 {dimension_numbers = #tpu.dot_dimension_numbers<[1], [0], [0], [1], [0, 0, 1, 1], [], []>} : vector<16x32xf32>, vector<32x32xf32>, vector<16x32xf32> -> vector<16x32xf32>
      %c0_29 = arith.constant 0 : index
      %c0_30 = arith.constant 0 : index
      %26 = vector.load %arg10[%c0_29, %c0_30] : memref<1x32xf32, #tpu.memory_space<vmem>>, vector<1x32xf32>
      %27 = vector.broadcast %26 : vector<1x32xf32> to vector<16x32xf32>
      %28 = arith.addf %25, %27 : vector<16x32xf32>
      %29 = arith.addf %28, %17 : vector<16x32xf32>
      %c0_31 = arith.constant 0 : index
      %c0_32 = arith.constant 0 : index
      %30 = vector.load %arg11[%c0_31, %c0_32] : memref<32x64xf32, #tpu.memory_space<vmem>>, vector<32x64xf32>
      %cst_33 = arith.constant dense<0.000000e+00> : vector<16x64xf32>
      %31 = tpu.matmul %29, %30, %cst_33 {dimension_numbers = #tpu.dot_dimension_numbers<[1], [0], [0], [1], [0, 0, 1, 1], [], []>} : vector<16x32xf32>, vector<32x64xf32>, vector<16x64xf32> -> vector<16x64xf32>
      %c0_34 = arith.constant 0 : index
      %c0_35 = arith.constant 0 : index
      %32 = vector.load %arg12[%c0_34, %c0_35] : memref<1x64xf32, #tpu.memory_space<vmem>>, vector<1x64xf32>
      %33 = vector.broadcast %32 : vector<1x64xf32> to vector<16x64xf32>
      %34 = arith.addf %31, %33 : vector<16x64xf32>
      %35 = arith.mulf %34, %34 : vector<16x64xf32>
      %36 = arith.mulf %34, %35 : vector<16x64xf32>
      %cst_36 = arith.constant 4.471500e-02 : f32
      %37 = vector.broadcast %cst_36 : f32 to vector<16x64xf32>
      %38 = arith.mulf %37, %36 : vector<16x64xf32>
      %39 = arith.addf %34, %38 : vector<16x64xf32>
      %cst_37 = arith.constant 0.797884583 : f32
      %40 = vector.broadcast %cst_37 : f32 to vector<16x64xf32>
      %41 = arith.mulf %40, %39 : vector<16x64xf32>
      %42 = math.tanh %41 : vector<16x64xf32>
      %cst_38 = arith.constant 1.000000e+00 : f32
      %43 = vector.broadcast %cst_38 : f32 to vector<16x64xf32>
      %44 = arith.addf %43, %42 : vector<16x64xf32>
      %cst_39 = arith.constant 5.000000e-01 : f32
      %45 = vector.broadcast %cst_39 : f32 to vector<16x64xf32>
      %46 = arith.mulf %45, %44 : vector<16x64xf32>
      %47 = arith.mulf %34, %46 : vector<16x64xf32>
      %c0_40 = arith.constant 0 : index
      %c0_41 = arith.constant 0 : index
      %48 = vector.load %arg13[%c0_40, %c0_41] : memref<64x32xf32, #tpu.memory_space<vmem>>, vector<64x32xf32>
      %cst_42 = arith.constant dense<0.000000e+00> : vector<16x32xf32>
      %49 = tpu.matmul %47, %48, %cst_42 {dimension_numbers = #tpu.dot_dimension_numbers<[1], [0], [0], [1], [0, 0, 1, 1], [], []>} : vector<16x64xf32>, vector<64x32xf32>, vector<16x32xf32> -> vector<16x32xf32>
      %c0_43 = arith.constant 0 : index
      %c0_44 = arith.constant 0 : index
      %50 = vector.load %arg14[%c0_43, %c0_44] : memref<1x32xf32, #tpu.memory_space<vmem>>, vector<1x32xf32>
      %51 = vector.broadcast %50 : vector<1x32xf32> to vector<16x32xf32>
      %52 = arith.addf %49, %51 : vector<16x32xf32>
      %53 = arith.addf %52, %29 : vector<16x32xf32>
      %c0_45 = arith.constant 0 : index
      %c0_46 = arith.constant 0 : index
      %c0_47 = arith.constant 0 : index
      %54 = vector.load %arg15[%c0_45, %c0_46, %c0_47] : memref<1x16x32xf32, #tpu.memory_space<vmem>>, vector<1x16x32xf32>
      %55 = vector.shape_cast %54 : vector<1x16x32xf32> to vector<16x32xf32>
      %56 = vector.shape_cast %53 : vector<16x32xf32> to vector<1x16x32xf32>
      tpu.vector_store %arg15[%c0_45, %c0_46, %c0_47], %56 {strides = array<i32>} : memref<1x16x32xf32, #tpu.memory_space<vmem>>, vector<1x16x32xf32>,
    } else {
    }
    return
  }
  func.func @transform_0(%arg0: i32, %arg1: i32, %arg2: i32) -> (i32, i32, i32) {
    %c0_i32 = arith.constant 0 : i32
    %c0_i32_0 = arith.constant 0 : i32
    return %arg0, %arg1, %c0_i32 : i32, i32, i32
  }
  func.func @transform_1(%arg0: i32, %arg1: i32, %arg2: i32) -> (i32, i32, i32) {
    %c0_i32 = arith.constant 0 : i32
    %c0_i32_0 = arith.constant 0 : i32
    return %arg0, %arg2, %c0_i32 : i32, i32, i32
  }
  func.func @transform_2(%arg0: i32, %arg1: i32, %arg2: i32) -> (i32, i32) {
    %c0_i32 = arith.constant 0 : i32
    %c0_i32_0 = arith.constant 0 : i32
    %c0_i32_1 = arith.constant 0 : i32
    return %c0_i32, %c0_i32_0 : i32, i32
  }
  func.func @transform_3(%arg0: i32, %arg1: i32, %arg2: i32) -> (i32, i32) {
    %c0_i32 = arith.constant 0 : i32
    %c0_i32_0 = arith.constant 0 : i32
    %c0_i32_1 = arith.constant 0 : i32
    return %c0_i32, %c0_i32_0 : i32, i32
  }
  func.func @transform_4(%arg0: i32, %arg1: i32, %arg2: i32) -> (i32, i32) {
    %c0_i32 = arith.constant 0 : i32
    %c0_i32_0 = arith.constant 0 : i32
    %c0_i32_1 = arith.constant 0 : i32
    return %c0_i32, %c0_i32_0 : i32, i32
  }
  func.func @transform_5(%arg0: i32, %arg1: i32, %arg2: i32) -> (i32, i32) {
    %c0_i32 = arith.constant 0 : i32
    %c0_i32_0 = arith.constant 0 : i32
    %c0_i32_1 = arith.constant 0 : i32
    return %c0_i32, %c0_i32_0 : i32, i32
  }
  func.func @transform_6(%arg0: i32, %arg1: i32, %arg2: i32) -> (i32, i32) {
    %c0_i32 = arith.constant 0 : i32
    %c0_i32_0 = arith.constant 0 : i32
    %c0_i32_1 = arith.constant 0 : i32
    return %c0_i32, %c0_i32_0 : i32, i32
  }
  func.func @transform_7(%arg0: i32, %arg1: i32, %arg2: i32) -> (i32, i32) {
    %c0_i32 = arith.constant 0 : i32
    %c0_i32_0 = arith.constant 0 : i32
    %c0_i32_1 = arith.constant 0 : i32
    return %c0_i32, %c0_i32_0 : i32, i32
  }
  func.func @transform_8(%arg0: i32, %arg1: i32, %arg2: i32) -> (i32, i32) {
    %c0_i32 = arith.constant 0 : i32
    %c0_i32_0 = arith.constant 0 : i32
    %c0_i32_1 = arith.constant 0 : i32
    return %c0_i32, %c0_i32_0 : i32, i32
  }
  func.func @transform_9(%arg0: i32, %arg1: i32, %arg2: i32) -> (i32, i32) {
    %c0_i32 = arith.constant 0 : i32
    %c0_i32_0 = arith.constant 0 : i32
    %c0_i32_1 = arith.constant 0 : i32
    return %c0_i32, %c0_i32_0 : i32, i32
  }
  func.func @transform_10(%arg0: i32, %arg1: i32, %arg2: i32) -> (i32, i32) {
    %c0_i32 = arith.constant 0 : i32
    %c0_i32_0 = arith.constant 0 : i32
    %c0_i32_1 = arith.constant 0 : i32
    return %c0_i32, %c0_i32_0 : i32, i32
  }
  func.func @transform_11(%arg0: i32, %arg1: i32, %arg2: i32) -> (i32, i32) {
    %c0_i32 = arith.constant 0 : i32
    %c0_i32_0 = arith.constant 0 : i32
    %c0_i32_1 = arith.constant 0 : i32
    return %c0_i32, %c0_i32_0 : i32, i32
  }
  func.func @transform_12(%arg0: i32, %arg1: i32, %arg2: i32) -> (i32, i32, i32) {
    %c0_i32 = arith.constant 0 : i32
    %c0_i32_0 = arith.constant 0 : i32
    return %arg0, %arg1, %c0_i32 : i32, i32, i32
  }
}

</mosaic_0001>

<bundles_post_ra>
// kernel: tpu_custom_call.1
= control target key start
LH: loop header
LB: loop body
LE: loop exit
PB: predicated region body
PF: predicated region fallthrough
CT: control target
= control target key end

     0   :  { %s2709_s0 = inlined_call_operand.vmem [shape: f32[2,16,32], index: 0, kind: input, shape index: {}]   ;;  %s2710_s1 = inlined_call_operand.vmem [shape: f32[2,32,32], index: 1, kind: input, shape index: {}]   ;;  %s2711_s2 = inlined_call_operand.hbm [shape: f32[32,32], index: 2, kind: input, shape index: {}]   ;;  %s2712_s3 = inlined_call_operand.hbm [shape: f32[32,32], index: 3, kind: input, shape index: {}]   ;;  %s2713_s4 = inlined_call_operand.hbm [shape: f32[32,32], index: 4, kind: input, shape index: {}]   ;;  %s2714_s5 = inlined_call_operand.hbm [shape: f32[32,32], index: 5, kind: input, shape index: {}]   ;;  %s2715_s6 = inlined_call_operand.hbm [shape: f32[32,32], index: 6, kind: input, shape index: {}]   ;;  %s2716_s7 = inlined_call_operand.vmem [shape: f32[1,32], index: 7, kind: input, shape index: {}]   ;;  %s2717_s8 = inlined_call_operand.hbm [shape: f32[32,64], index: 8, kind: input, shape index: {}]   ;;  %s2718_s9 = inlined_call_operand.vmem [shape: f32[1,64], index: 9, kind: input, shape index: {}]   ;;  %s2719_s10 = inlined_call_operand.vmem [shape: f32[64,32], index: 10, kind: input, shape index: {}]   ;;  %s2720_s11 = inlined_call_operand.vmem [shape: f32[1,32], index: 11, kind: input, shape index: {}]   ;;  %s2721_s12 = inlined_call_operand.hbm [shape: f32[2,16,32], index: 12, kind: output, shape index: {}]  }
   0x1   :  { %2736 = sst [smem:[#allocation28_spill]] %s2712_s3 }
   0x2   :  { %2737 = sst [smem:[#allocation29_spill]] %s2720_s11 }
   0x3   :  { %2738 = sst [smem:[#allocation30_spill]] %s2721_s12 }
   0x4   :  { %17 = vsyncpa [#allocation4], 0 }
   0x5   :  { %18 = vsyncpa [#allocation7], 0 }
   0x6   :  { %19 = vsyncpa [#allocation10], 0 }
   0x7   :  { %20 = vsyncpa [#allocation13], 0 }
   0x8   :  { %21 = vsyncpa [#allocation5], 0 }
   0x9   :  { %23 = vsyncpa [#allocation5 + $0x1], 0  ;;  %s2339_s21 = smov 0   ;;  %s2341_s22 = smov 0  }
   0xa   :  { %s2343_s23 = smov 0   ;;  %s2345_s24 = smov 0  }
   0xb   :  { %s2347_s25 = smov 0   ;;  %s2349_s26 = smov 0  }
   0xc LB: > { %2739 = sst [smem:[#allocation20_spill]] %s2240_s21  ;;  %s1583_s27 = sadd.s32 4294967295, %s2260_s26   ;;  %s2260_s26 = sphi %s2349_s26, %s29_s26   ;;  %s2256_s25 = sphi %s2347_s25, %s2767_s25   ;;  %s2252_s24 = sphi %s2345_s24, %s2766_s24   ;;  %s2248_s23 = sphi %s2343_s23, %s2765_s23   ;;  %s2244_s22 = sphi %s2341_s22, %s2769_s22   ;;  %s2240_s21 = sphi %s2339_s21, %s2768_s21  }
   0xd   : > { %2740 = sst [smem:[#allocation21_spill]] %s2248_s23  ;;  %s1584_s28 = sadd.s32 4294967294, %s2260_s26  }
   0xe   : > { %2741 = sst [smem:[#allocation22_spill]] %s2256_s25  ;;  %s48_s29 = sadd.s32 1, %s2256_s25 }
   0xf   : > { %2742 = sst [smem:[#allocation23_spill]] %s2260_s26  ;;  %s323_s30 = sadd.s32 1, %s2248_s23 }
  0x10   : > { %p50_p0 = scmp.ge.s32.totalorder %s48_s29, 2  ;;  %p333_p1 = scmp.ne.s32.totalorder %s2248_s23, %s2244_s22 }
  0x11   : > { %p334_p2 = scmp.eq.s32.totalorder %s1583_s27, 1  ;;  %p339_p3 = scmp.ne.s32.totalorder %s2244_s22, %s2240_s21 }
  0x12   : > { %s2771_s29 = smov (%p50_p0, %s48_s29), 0  ;;  %p340_p5 = scmp.eq.s32.totalorder %s1584_s28, 1 }
  0x13   : > { %2743 = sst [smem:[#allocation24_spill]] %s2771_s29  ;;  %p2379_p4 = por %p334_p2, %p333_p1 }
  0x14   : > { %s318_s14 = ssub.s32 %s2256_s25, %s2771_s29  ;;  %p1585_p6 = scmp.ge.s32.totalorder %s2260_s26, 1 }
  0x15   : > { %s2744_s13 = scalar_select %p2379_p4, 1, 0 }
  0x16   : > { %p321_p7 = scmp.eq.s32.totalorder %s318_s14, 0  ;;  %p2386_p8 = por %p340_p5, %p339_p3 }
  0x17   : > { %2745 = sst [smem:[#allocation25_spill]] %s2744_s13  ;;  %p347_p9 = scmp.lt.s32.totalorder %s2260_s26, 3 }
  0x18   : > { %s2746_s15 = scalar_select %p2386_p8, 1, 0 }
  0x19   : > { %s2392_s16 = scalar_select %p321_p7, %s2248_s23, %s323_s30  }
  0x1a   : > { %2747 = sst [smem:[#allocation26_spill]] %s2746_s15  ;;  %p2394_p10 = pnand %p1585_p6, %p347_p9 }
  0x1b   : > { %2748 = sst [smem:[#allocation27_spill]] %s2392_s16  ;;  %p2398_p11 = scmp.eq.s32.totalorder %s1583_s27, 0 }
  0x1c   : > { %s2749_s17 = scalar_select %p2394_p10, 1, 0 }
  0x1d   : > { %s2750_s18 = scalar_select %p2398_p11, 1, 0 }
  0x1e   : > { %p1899_p12 = pneg %p2394_p10  ;;  %s2262_s19 = smov [#allocation6]  }
  0x1f   : > { %s372_s20 = sshll.u32 %s2262_s19, 4  ;;  %s2263_s30 = smov [#allocation9]   ;;  %s373_s20 = int_to_ptr.vmem [resolvable:$true] %s372_s20 }
  0x20   : > { %p2406_p13 = pnand %p2398_p11, %p1899_p12  ;;  %s398_s14 = sshll.u32 %s2263_s30, 4  ;;  %s2410_s14 = int_to_ptr.vmem [resolvable:$true] %s398_s14 }
  0x21   : > { %s2752_s3 = sld [smem:[#allocation28_spill]] }
  0x22   : > { %p2420_p1 = pneg %p2406_p13 }
  0x27   : > { %s1998_s25 = scalar_lea.hbm %s2752_s3, 512 }
  0x28   : > { %p1999_p0 = scmp.ne.s32.totalorder %s2752_s3, %s1998_s25  ;;  %p2005_p5 = scmp.lt.u32.totalorder %s1998_s25, %s2752_s3 }
  0x2a   : > { %p2001_p2 = pnand %p2420_p1, %p1999_p0 }
  0x2c   : > { %p2002_p3 = pneg %p2001_p2 }
  0x2e   : > { %p2007_p6 = pnand %p2005_p5, %p2002_p3 }
  0x30   : > { %2010 = shalt.err (!%p2007_p6)
}
  0x31   : > { %s2011_s29 = scalar_lea.vmem %s373_s20, 512  ;;  %p2019_p8 = scmp.lt.s32.totalorder %s373_s20, %s373_s20 }
  0x32   : > { %p2012_p7 = scmp.ne.s32.totalorder %s373_s20, %s2011_s29  ;;  %p2020_p4 = scmp.lt.s32.totalorder %s2011_s29, %s2011_s29 }
  0x34   : > { %p2014_p9 = pnand %p2012_p7, %p2420_p1  ;;  %p2021_p11 = por %p2020_p4, %p2019_p8 }
  0x36   : > { %p2015_p12 = pneg %p2014_p9 }
  0x38   : > { %p2022_p10 = pnand %p2021_p11, %p2015_p12 }
  0x3a   : > { %2025 = shalt.err (!%p2022_p10)
}
  0x3b   : > { %s2264_s23 = smov 128   ;;  %s2265_s16 = smov 8  }
  0x3c   : > { %1905 = dma.hbm_to_vmem [thread:$0]  (!%p2406_p13), %s2752_s3, 512, %s373_s20, [#allocation7], %s2264_s23, %s2264_s23, %s2265_s16  }
  0x3d   : > { %s2026_s21 = scalar_lea.hbm %s2714_s5, 512 }
  0x3e   : > { %p2027_p4 = scmp.ne.s32.totalorder %s2714_s5, %s2026_s21  ;;  %p2033_p11 = scmp.lt.u32.totalorder %s2026_s21, %s2714_s5 }
  0x40   : > { %p2029_p8 = pnand %p2027_p4, %p2420_p1 }
  0x42   : > { %p2030_p10 = pneg %p2029_p8 }
  0x44   : > { %p2035_p0 = pnand %p2033_p11, %p2030_p10 }
  0x46   : > { %2038 = shalt.err (!%p2035_p0)
}
  0x47   : > { %s2039_s20 = scalar_lea.vmem %s2410_s14, 512  ;;  %p2047_p6 = scmp.lt.s32.totalorder %s2410_s14, %s2410_s14 }
  0x48   : > { %p2040_p2 = scmp.ne.s32.totalorder %s2410_s14, %s2039_s20  ;;  %p2048_p7 = scmp.lt.s32.totalorder %s2039_s20, %s2039_s20 }
  0x4a   : > { %p2042_p3 = pnand %p2040_p2, %p2420_p1  ;;  %p2049_p9 = por %p2048_p7, %p2047_p6 }
  0x4c   : > { %p2043_p5 = pneg %p2042_p3 }
  0x4e   : > { %p2050_p12 = pnand %p2049_p9, %p2043_p5 }
  0x50   : > { %2053 = shalt.err (!%p2050_p12)
}
  0x51   : > { %1911 = dma.hbm_to_vmem [thread:$0]  (!%p2406_p13), %s2714_s5, 512, %s2410_s14, [#allocation10], %s2264_s23, %s2264_s23, %s2265_s16  }
  0x52   : > { %s2266_s26 = smov [#allocation3]   ;;  %s2267_s25 = smov [#allocation8]  }
  0x53   : > { %s359_s13 = sshll.u32 %s2266_s26, 4  ;;  %s385_s15 = sshll.u32 %s2267_s25, 4  ;;  %s360_s13 = int_to_ptr.vmem [resolvable:$true] %s359_s13  ;;  %s386_s15 = int_to_ptr.vmem [resolvable:$true] %s385_s15 }
  0x54   : > { %s2054_s29 = scalar_lea.hbm %s2711_s2, 512 }
  0x55   : > { %p2055_p4 = scmp.ne.s32.totalorder %s2711_s2, %s2054_s29  ;;  %p2061_p11 = scmp.lt.u32.totalorder %s2054_s29, %s2711_s2 }
  0x57   : > { %p2057_p8 = pnand %p2055_p4, %p2420_p1 }
  0x59   : > { %p2058_p10 = pneg %p2057_p8 }
  0x5b   : > { %p2063_p0 = pnand %p2061_p11, %p2058_p10 }
  0x5d   : > { %2066 = shalt.err (!%p2063_p0)
}
  0x5e   : > { %s2067_s14 = scalar_lea.vmem %s360_s13, 512  ;;  %p2075_p6 = scmp.lt.s32.totalorder %s360_s13, %s360_s13 }
  0x5f   : > { %p2068_p2 = scmp.ne.s32.totalorder %s360_s13, %s2067_s14  ;;  %p2076_p7 = scmp.lt.s32.totalorder %s2067_s14, %s2067_s14 }
  0x61   : > { %p2070_p3 = pnand %p2068_p2, %p2420_p1  ;;  %p2077_p9 = por %p2076_p7, %p2075_p6 }
  0x63   : > { %p2071_p5 = pneg %p2070_p3 }
  0x65   : > { %p2078_p12 = pnand %p2077_p9, %p2071_p5 }
  0x67   : > { %2081 = shalt.err (!%p2078_p12)
}
  0x68   : > { %1902 = dma.hbm_to_vmem [thread:$0]  (!%p2406_p13), %s2711_s2, 512, %s360_s13, [#allocation4], %s2264_s23, %s2264_s23, %s2265_s16  }
  0x69   : > { %s2082_s25 = scalar_lea.hbm %s2713_s4, 512 }
  0x6a   : > { %p2083_p4 = scmp.ne.s32.totalorder %s2713_s4, %s2082_s25  ;;  %p2089_p11 = scmp.lt.u32.totalorder %s2082_s25, %s2713_s4 }
  0x6c   : > { %p2085_p8 = pnand %p2083_p4, %p2420_p1 }
  0x6e   : > { %p2086_p10 = pneg %p2085_p8 }
  0x70   : > { %p2091_p0 = pnand %p2089_p11, %p2086_p10 }
  0x72   : > { %2094 = shalt.err (!%p2091_p0)
}
  0x73   : > { %s2095_s12 = scalar_lea.vmem %s386_s15, 512  ;;  %p2103_p6 = scmp.lt.s32.totalorder %s386_s15, %s386_s15 }
  0x74   : > { %p2096_p2 = scmp.ne.s32.totalorder %s386_s15, %s2095_s12  ;;  %p2104_p7 = scmp.lt.s32.totalorder %s2095_s12, %s2095_s12 }
  0x76   : > { %p2098_p3 = pnand %p2096_p2, %p2420_p1  ;;  %p2105_p9 = por %p2104_p7, %p2103_p6 }
  0x78   : > { %p2099_p5 = pneg %p2098_p3 }
  0x7a   : > { %p2106_p12 = pnand %p2105_p9, %p2099_p5 }
  0x7c   : > { %2109 = shalt.err (!%p2106_p12)
}
  0x7d   : > { %1908 = dma.hbm_to_vmem [thread:$0]  (!%p2406_p13), %s2713_s4, 512, %s386_s15, [#allocation7], %s2264_s23, %s2264_s23, %s2265_s16  }
  0x7e   : > { %s2268_s3 = smov [#allocation11]   ;;  %s2269_s21 = smov [#allocation12]  }
  0x7f   : > { %s411_s11 = sshll.u32 %s2268_s3, 4  ;;  %s427_s26 = sshll.u32 %s2269_s21, 4  ;;  %s412_s11 = int_to_ptr.vmem [resolvable:$true] %s411_s11  ;;  %s428_s26 = int_to_ptr.vmem [resolvable:$true] %s427_s26 }
  0x80   : > { %s2110_s30 = scalar_lea.hbm %s2715_s6, 512 }
  0x81   : > { %p2111_p4 = scmp.ne.s32.totalorder %s2715_s6, %s2110_s30  ;;  %p2117_p11 = scmp.lt.u32.totalorder %s2110_s30, %s2715_s6 }
  0x83   : > { %p2113_p8 = pnand %p2111_p4, %p2420_p1 }
  0x85   : > { %p2114_p10 = pneg %p2113_p8 }
  0x87   : > { %p2119_p0 = pnand %p2117_p11, %p2114_p10 }
  0x89   : > { %2122 = shalt.err (!%p2119_p0)
}
  0x8a   : > { %s2123_s15 = scalar_lea.vmem %s412_s11, 512  ;;  %p2131_p6 = scmp.lt.s32.totalorder %s412_s11, %s412_s11 }
  0x8b   : > { %p2124_p2 = scmp.ne.s32.totalorder %s412_s11, %s2123_s15  ;;  %p2132_p7 = scmp.lt.s32.totalorder %s2123_s15, %s2123_s15 }
  0x8d   : > { %p2126_p3 = pnand %p2124_p2, %p2420_p1  ;;  %p2133_p9 = por %p2132_p7, %p2131_p6 }
  0x8f   : > { %p2127_p5 = pneg %p2126_p3 }
  0x91   : > { %p2134_p12 = pnand %p2133_p9, %p2127_p5 }
  0x93   : > { %2137 = shalt.err (!%p2134_p12)
}
  0x94   : > { %1914 = dma.hbm_to_vmem [thread:$0]  (!%p2406_p13), %s2715_s6, 512, %s412_s11, [#allocation10], %s2264_s23, %s2264_s23, %s2265_s16  }
  0x95   : > { %s2138_s27 = scalar_lea.hbm %s2717_s8, 512 }
  0x96   : > { %p2139_p4 = scmp.ne.s32.totalorder %s2717_s8, %s2138_s27  ;;  %p2145_p11 = scmp.lt.u32.totalorder %s2138_s27, %s2717_s8 }
  0x98   : > { %p2141_p8 = pnand %p2139_p4, %p2420_p1 }
  0x9a   : > { %p2142_p10 = pneg %p2141_p8 }
  0x9c   : > { %p2147_p0 = pnand %p2145_p11, %p2142_p10 }
  0x9e   : > { %2150 = shalt.err (!%p2147_p0)
}
  0x9f   : > { %s2151_s13 = scalar_lea.vmem %s428_s26, 512  ;;  %p2159_p6 = scmp.lt.s32.totalorder %s428_s26, %s428_s26 }
  0xa0   : > { %p2152_p2 = scmp.ne.s32.totalorder %s428_s26, %s2151_s13  ;;  %p2160_p7 = scmp.lt.s32.totalorder %s2151_s13, %s2151_s13 }
  0xa2   : > { %p2154_p3 = pnand %p2152_p2, %p2420_p1  ;;  %p2161_p9 = por %p2160_p7, %p2159_p6 }
  0xa4   : > { %p2155_p5 = pneg %p2154_p3 }
  0xa6   : > { %p2162_p12 = pnand %p2161_p9, %p2155_p5 }
  0xa8   : > { %2165 = shalt.err (!%p2162_p12)
}
  0xa9   : > { %1917 = dma.hbm_to_vmem [thread:$0]  (!%p2406_p13), %s2717_s8, 512, %s428_s26, [#allocation13], %s2264_s23, %s2264_s23, %s2265_s16  }
  0xaa   : > { %p2754_p4 = scmp.ne.s32.totalorder %s2749_s17, 0 }
  0xab   : > { %p2755_p1 = scmp.ne.s32.totalorder (!%p2754_p4), %s2750_s18, 0 }
  0xac   : > { %478 = sbr.rel (%p2754_p4) target bundleno = 1689 (0x699), region = 68 }
  0xb3   : > { %2219 = dma.done.wait (%p2755_p1), [#allocation4], 512  }
  0xb4   : > { %2221 = vsyncadd (%p2755_p1), [#allocation4], 4294966784 }
  0xb5   : > { %2223 = dma.done.wait (%p2755_p1), [#allocation7], 1024  }
  0xb6   : > { %2225 = vsyncadd (%p2755_p1), [#allocation7], 4294966272 }
  0xb7   : > { %2227 = dma.done.wait (%p2755_p1), [#allocation10], 1024  }
  0xb8   : > { %2229 = vsyncadd (%p2755_p1), [#allocation10], 4294966272 }
  0xb9   : > { %2231 = dma.done.wait (%p2755_p1), [#allocation13], 512  }
  0xba   : > { %2233 = vsyncadd (%p2755_p1), [#allocation13], 4294966784  ;;  %p554_p13 = scmp.lt.s32.totalorder %s2252_s24, 1  ;;  %vm578_vm0 = vcmask 261120   ;;  %v587_v0 = vld [vmem:[#allocation8] sm:$0xff]  ;;  %v588_v1 = vld [vmem:[#allocation8 + $0x8] sm:$0xff] }
  0xbb   : > { %v589_v2 = vld [vmem:[#allocation8 + $0x10] sm:$0xff]  ;;  %v1801_v3 = vpack.c.bf16 %v588_v1, %v587_v0  ;;  %v590_v4 = vld [vmem:[#allocation8 + $0x18] sm:$0xff]  ;;  %v689_v7 = vld [vmem:[#allocation9] sm:$0xff]  ;;  %v2270_v31 = vmov 0.0   ;;  %vm1321_vm1 = vcmask 523264   ;;  %s550_s25 = sand.u32 1, %s2244_s22  }
  0xbc   : > { %s2569_s17 = scalar_select %p554_p13, %s2252_s24, 1  ;;  %v1805_v6 = vpack.c.bf16 %v590_v4, %v589_v2  ;;  %v690_v8 = vld [vmem:[#allocation9 + $0x8] sm:$0xff]  ;;  %v691_v9 = vld [vmem:[#allocation9 + $0x10] sm:$0xff]  ;;  %v692_v10 = vld [vmem:[#allocation9 + $0x18] sm:$0xff]  ;;  %580 = vst.msk [vmem:[#allocation2 + $0x8] sm:$0xff] %vm578_vm0, %v2270_v31 }
  0xbd   : > { %1802 = vmatprep.subr.bf16.mxu0 %v1801_v3  ;;  %v1809_v11 = vpack.c.bf16 %v690_v8, %v689_v7  ;;  %v1813_v12 = vpack.c.bf16 %v692_v10, %v691_v9  ;;  %v924_v26 = vld [vmem:[#allocation6] sm:$0xff]  ;;  %v925_v27 = vld [vmem:[#allocation6 + $0x8] sm:$0xff]  ;;  %v926_v28 = vld [vmem:[#allocation6 + $0x10] sm:$0xff]  ;;  %579 = vst.msk [vmem:[#allocation2] sm:$0xff] %vm578_vm0, %v2270_v31  ;;  %s1600_s27 = sshll.u32 %s550_s25, 4  ;;  %s2756_s20 = sld [smem:[#allocation29_spill]] }
  0xbe   : > { %s1636_s28 = sshll.u32 %s2569_s17, 5  ;;  %1804 = vmatpush3.bf16.msra.mxu0 %v1801_v3  ;;  %s1635_s18 = sshll.u32 %s2569_s17, 4  ;;  %v1825_v29 = vpack.c.bf16 %v925_v27, %v924_v26  ;;  %v927_v30 = vld [vmem:[#allocation6 + $0x18] sm:$0xff]  ;;  %581 = vst.msk [vmem:[#allocation2 + $0x10] sm:$0xff] %vm578_vm0, %v2270_v31  ;;  %582 = vst.msk [vmem:[#allocation2 + $0x18] sm:$0xff] %vm578_vm0, %v2270_v31  ;;  %v1102_v41 = vld [vmem:[#allocation11] sm:$0xff] }
  0xbf   : > { %s571_s16 = scalar_lea.vmem %s2710_s1, %s1636_s28  ;;  %1806 = vmatprep.subr.bf16.mxu0 %v1805_v6  ;;  %1810 = vmatprep.subr.bf16.mxu1 %v1809_v11  ;;  %s561_s3 = scalar_lea.vmem %s2709_s0, %s1635_s18  ;;  %v1829_v32 = vpack.c.bf16 %v927_v30, %v926_v28  ;;  %v1103_v42 = vld [vmem:[#allocation11 + $0x8] sm:$0xff]  ;;  %v1104_v43 = vld [vmem:[#allocation11 + $0x10] sm:$0xff]  ;;  %v1105_v45 = vld [vmem:[#allocation11 + $0x18] sm:$0xff] }
  0xc0   : > { %v583_v5 = vld [vmem:[%s571_s16] sm:$0xff]  ;;  %1812 = vmatpush3.bf16.msra.mxu1 %v1809_v11  ;;  %v584_v13 = vld [vmem:[%s571_s16 + $0x8] sm:$0xff]  ;;  %v585_v14 = vld [vmem:[%s571_s16 + $0x10] sm:$0xff]  ;;  %v1841_v44 = vpack.c.bf16 %v1103_v42, %v1102_v41  ;;  %v1845_v46 = vpack.c.bf16 %v1105_v45, %v1104_v43  ;;  %s2757_s12 = sld [smem:[#allocation25_spill]]  ;;  %s1637_s13 = sshll.u32 %s2252_s24, 8 }
  0xc1   : > { %1704 = vmatprep.mubr.msk.f32.mxu0 %vm578_vm0, %v583_v5  ;;  %1718 = vmatprep.mubr.msk.f32.mxu1 %vm578_vm0, %v583_v5  ;;  %v586_v15 = vld [vmem:[%s571_s16 + $0x18] sm:$0xff]  ;;  %v2591_v33 = vld [vmem:[%s561_s3] sm:$0xff]  ;;  %v2595_v34 = vld [vmem:[%s561_s3 + $0x8] sm:$0xff]  ;;  %s552_s11 = scalar_lea.vmem [#allocation14], %s1600_s27  ;;  %s2758_s19 = sld [smem:[#allocation30_spill]] }
  0xc2   : > { %1808 = vmatpush3.bf16.msra.mxu0 %v1805_v6  ;;  %1814 = vmatprep.subr.bf16.mxu1 %v1813_v12  ;;  %v1014_v56 = vld [vmem:[#allocation3 + $0x8] sm:$0xff]  ;;  %v1013_v59 = vld [vmem:[#allocation3] sm:$0xff]  ;;  %v1016_v2 = vld [vmem:[#allocation3 + $0x18] sm:$0xff]  ;;  %s1423_s15 = sshll.u32 %s552_s11, 4  ;;  %s2663_s24 = scalar_lea.sflag [#allocation5], %s550_s25  ;;  %s2658_s15 = int_to_ptr.vmem [resolvable:$true] %s1423_s15 }
  0xc3   : > { %v779_v47 = vld [vmem:[#allocation2 + $0x8] sm:$0xff]  ;;  %v1015_v3 = vld [vmem:[#allocation3 + $0x10] sm:$0xff]  ;;  %v1196_v9 = vld [vmem:[#allocation12] sm:$0xff]  ;;  %s2166_s16 = scalar_lea.vmem %s2658_s15, 256  ;;  %s2271_s18 = smov [#allocation14]  }
  0xc4   : > { %1816 = vmatpush3.bf16.msra.mxu1 %v1813_v12  ;;  %v778_v48 = vld [vmem:[#allocation2] sm:$0xff]  ;;  %v1197_v10 = vld [vmem:[#allocation12 + $0x8] sm:$0xff]  ;;  %v1308_v27 = vld [vmem:[%s2719_s10 + $0x10] sm:$0xff]  ;;  %p2167_p8 = scmp.ne.s32.totalorder %s2658_s15, %s2166_s16  ;;  %s2170_s26 = sshll.u32 %s2271_s18, 4  ;;  %s2171_s26 = int_to_ptr.vmem [resolvable:$false] %s2170_s26 }
  0xc5   : > { %1705 = vmatmul.mubr.msk.f32.vlgmr.msra.gmra.mrb[0].mxu0 %vm578_vm0, %v584_v13  ;;  %1826 = vmatprep.subr.bf16.mxu1 %v1825_v29  ;;  %v781_v53 = vld [vmem:[#allocation2 + $0x18] sm:$0xff]  ;;  %v780_v54 = vld [vmem:[#allocation2 + $0x10] sm:$0xff]  ;;  %v1849_v11 = vpack.c.bf16 %v1197_v10, %v1196_v9  ;;  %v1310_v30 = vld [vmem:[%s2719_s10 + $0x20] sm:$0xff]  ;;  %s2172_s14 = scalar_lea.vmem %s2171_s26, 512  ;;  %p2173_p2 = scmp.lt.s32.totalorder %s2658_s15, %s2171_s26 }
  0xc6   : > { %1707 = vmatprep.mubr.msk.f32.mxu0 %vm578_vm0, %v585_v14  ;;  %v1309_v28 = vld [vmem:[%s2719_s10 + $0x18] sm:$0xff]  ;;  %v1311_v31 = vld [vmem:[%s2719_s10 + $0x28] sm:$0xff]  ;;  %p2759_p10 = scmp.ne.s32.totalorder %s2757_s12, 0  ;;  %p2174_p3 = scmp.lt.s32.totalorder %s2172_s14, %s2166_s16 }
  0xc7   : > { %1719 = vmatmul.mubr.msk.f32.vlgmr.msra.gmra.mrb[0].mxu1 %vm578_vm0, %v584_v13  ;;  %s2656_s23 = scalar_lea.hbm %s2758_s19, %s1637_s13 }
  0xc8   : > { %1721 = vmatprep.mubr.msk.f32.mxu1 %vm578_vm0, %v585_v14  ;;  %1828 = vmatpush3.bf16.msra.mxu1 %v1825_v29  ;;  %v1198_v14 = vld [vmem:[#allocation12 + $0x10] sm:$0xff]  ;;  %v1861_v29 = vpack.c.bf16 %v1309_v28, %v1308_v27  ;;  %p2168_p11 = pnand %p2167_p8, %p2759_p10  ;;  %p2175_p5 = por %p2174_p3, %p2173_p2 }
  0xc9   : > { %1708 = vmatmul.mubr.msk.f32.gmra.mrb[2].mxu0 %vm578_vm0, %v586_v15  ;;  %1830 = vmatprep.subr.bf16.mxu1 %v1829_v32 }
  0xca   : > { %p2169_p0 = pneg %p2168_p11 }
  0xcb   : > { %1722 = vmatmul.mubr.msk.f32.gmra.mrb[2].mxu1 %vm578_vm0, %v586_v15  ;;  %v1199_v15 = vld [vmem:[#allocation12 + $0x18] sm:$0xff] }
  0xcc   : > { %1746 = vmatprep.mubr.msk.f32.mxu1 %vm578_vm0, %v2591_v33  ;;  %1832 = vmatpush3.bf16.msra.mxu1 %v1829_v32  ;;  %v1865_v32 = vpack.c.bf16 %v1311_v31, %v1310_v30  ;;  %p2176_p6 = pnand %p2175_p5, %p2169_p0 }
  0xcd   : > { %1842 = vmatprep.subr.bf16.mxu1 %v1841_v44 }
  0xcf   : > { %1747 = vmatmul.mubr.msk.f32.vlgmr.msra.gmra.mrb[4].mxu1 %vm578_vm0, %v2595_v34 }
  0xd0   : > { %1844 = vmatpush3.bf16.msra.mxu1 %v1841_v44 }
  0xd1   : > { %1846 = vmatprep.subr.bf16.mxu1 %v1845_v46 }
  0xd4   : > { %1848 = vmatpush3.bf16.msra.mxu1 %v1845_v46 }
 0x198   : > { %v1706_v16 = vpop.f32.mrb[0].mxu0 }
 0x199   : > { %v670_v17 = vpop.f32.mrb[1].mxu0 }
 0x19a   : > { %782 = vxpose.xlu0.b32.start [1/4] (short) (narrow) %v670_v17, 32  ;;  %v1720_v18 = vpop.f32.mrb[0].mxu1  ;;  %v1621_v17 = vld [vmem:[%s2716_s7] ss:$0 sm:$0xff] }
 0x19b   : > { %v759_v20 = vpop.f32.mrb[1].mxu1 }
 0x19c   : > { %v1709_v19 = vpop.f32.mrb[2].mxu0  ;;  %v1817_v22 = vpack.c.bf16 %v1720_v18, %v759_v20 }
 0x19d   : > { %v680_v21 = vpop.f32.mrb[3].mxu0 }
 0x19e   : > { %783 = vxpose.xlu0.b32.cont [2/4] (short) (narrow) %v1706_v16, 32  ;;  %v1723_v23 = vpop.f32.mrb[2].mxu1  ;;  %1818 = vmatprep.subr.bf16.mxu0 %v1817_v22  ;;  %v1853_v16 = vpack.c.bf16 %v1199_v15, %v1198_v14 }
 0x19f   : > { %v769_v24 = vpop.f32.mrb[3].mxu1  ;;  %1820 = vmatpush3.bf16.msra.mxu0 %v1817_v22 }
 0x1a0   : > { %v1821_v25 = vpack.c.bf16 %v1723_v23, %v769_v24  ;;  %v1306_v24 = vld [vmem:[%s2719_s10] sm:$0xff] }
 0x1a2   : > { %784 = vxpose.xlu0.b32.cont [3/4] (short) (narrow) %v680_v21, 32  ;;  %1822 = vmatprep.subr.bf16.mxu0 %v1821_v25  ;;  %v1748_v39 = vpop.f32.mrb[4].mxu1 }
 0x1a3   : > { %1824 = vmatpush3.bf16.msra.mxu0 %v1821_v25  ;;  %v1000_v40 = vpop.f32.mrb[5].mxu1  ;;  %v1307_v25 = vld [vmem:[%s2719_s10 + $0x8] sm:$0xff] }
 0x1a4   : > { %v1857_v26 = vpack.c.bf16 %v1307_v25, %v1306_v24 }
 0x1a6   : > { %785 = vxpose.xlu0.b32.end [4/4] (short) (narrow) %v1709_v19, 32  ;;  %1858 = vmatprep.subr.bf16.mxu1 %v1857_v26 }
 0x21a   : > { %v798_v35 = vpop.trf.xlu0 }
 0x21b   : > { %1732 = vmatprep.mubr.msk.f32.mxu0 %vm578_vm0, %v798_v35 }
 0x21e   : > { %v799_v36 = vpop.trf.xlu0 }
 0x21f   : > { %1733 = vmatmul.mubr.msk.f32.vlgmr.msra.gmra.mrb[4].mxu0 %vm578_vm0, %v799_v36  ;;  %v1624_v36 = vld [vmem:[%s2718_s9] ss:$0 sm:$0xff] }
 0x222   : > { %v800_v37 = vpop.trf.xlu0 }
 0x223   : > { %1735 = vmatprep.mubr.msk.f32.mxu0 %vm578_vm0, %v800_v37 }
 0x226   : > { %v801_v38 = vpop.trf.xlu0 }
 0x227   : > { %1736 = vmatmul.mubr.msk.f32.gmra.mrb[6].mxu0 %vm578_vm0, %v801_v38 }
 0x228   : > { %1757 = vmatprep.mubr.msk.f32.mxu0 %vm578_vm0, %v1000_v40 }
 0x2f2   : > { %v1734_v49 = vpop.f32.mrb[4].mxu0 }
 0x2f3   : > { %v912_v50 = vadd.f32 %v1734_v49, %v779_v47  ;;  %v892_v51 = vpop.f32.mrb[5].mxu0 }
 0x2f4   : > { %v911_v52 = vadd.f32 %v892_v51, %v778_v48 }
 0x2f5   : > { %916 = vst.msk [vmem:[#allocation2 + $0x8] sm:$0xff] %vm578_vm0, %v912_v50 }
 0x2f6   : > { %915 = vst.msk [vmem:[#allocation2] sm:$0xff] %vm578_vm0, %v911_v52 }
 0x2fa   : > { %v1737_v55 = vpop.f32.mrb[6].mxu0 }
 0x2fb   : > { %v914_v57 = vadd.f32 %v1737_v55, %v781_v53  ;;  %v902_v58 = vpop.f32.mrb[7].mxu0 }
 0x2fc   : > { %v913_v60 = vadd.f32 %v902_v58, %v780_v54  ;;  %v1010_v61 = vld [vmem:[#allocation2 + $0x8] sm:$0xff] }
 0x2fd   : > { %918 = vst.msk [vmem:[#allocation2 + $0x18] sm:$0xff] %vm578_vm0, %v914_v57  ;;  %v1009_v62 = vld [vmem:[#allocation2] sm:$0xff]  ;;  %v1018_v63 = vmul.f32 %v1014_v56, %v1010_v61 }
 0x2fe   : > { %917 = vst.msk [vmem:[#allocation2 + $0x10] sm:$0xff] %vm578_vm0, %v913_v60  ;;  %v1017_v0 = vmul.f32 %v1013_v59, %v1009_v62  ;;  %v1627_v59 = vld [vmem:[%s2756_s20] ss:$0 sm:$0xff] }
 0x300   : > { %v1833_v1 = vpack.c.bf16 %v1018_v63, %v1017_v0 }
 0x302   : > { %1834 = vmatprep.subr.bf16.mxu0 %v1833_v1 }
 0x303   : > { %1836 = vmatpush3.bf16.msra.mxu0 %v1833_v1 }
 0x304   : > { %v1012_v4 = vld [vmem:[#allocation2 + $0x18] sm:$0xff] }
 0x305   : > { %v1011_v5 = vld [vmem:[#allocation2 + $0x10] sm:$0xff]  ;;  %v1020_v6 = vmul.f32 %v1016_v2, %v1012_v4 }
 0x306   : > { %v1019_v7 = vmul.f32 %v1015_v3, %v1011_v5 }
 0x308   : > { %v1837_v8 = vpack.c.bf16 %v1020_v6, %v1019_v7 }
 0x30a   : > { %1838 = vmatprep.subr.bf16.mxu0 %v1837_v8 }
 0x30b   : > { %1840 = vmatpush3.bf16.msra.mxu0 %v1837_v8 }
 0x30c   : > { %1850 = vmatprep.subr.bf16.mxu0 %v1849_v11 }
 0x30e   : > { %1758 = vmatmul.mubr.msk.f32.vlgmr.msra.gmra.mrb[8].mxu0 %vm578_vm0, %v1748_v39 }
 0x30f   : > { %1852 = vmatpush3.bf16.msra.mxu0 %v1849_v11 }
 0x310   : > { %1854 = vmatprep.subr.bf16.mxu0 %v1853_v16 }
 0x313   : > { %1856 = vmatpush3.bf16.msra.mxu0 %v1853_v16 }
 0x3e1   : > { %v1759_v12 = vpop.f32.mrb[8].mxu0 }
 0x3e2   : > { %v1093_v13 = vpop.f32.mrb[9].mxu0 }
 0x3e3   : > { %1768 = vmatprep.mubr.msk.f32.mxu1 %vm578_vm0, %v1093_v13 }
 0x3e4   : > { %1769 = vmatmul.mubr.msk.f32.vlgmr.msra.gmra.mrb[6].mxu1 %vm578_vm0, %v1759_v12 }
 0x3e5   : > { %1860 = vmatpush3.bf16.msra.mxu1 %v1857_v26 }
 0x3e6   : > { %1862 = vmatprep.subr.bf16.mxu1 %v1861_v29 }
 0x3e9   : > { %1864 = vmatpush3.bf16.msra.mxu1 %v1861_v29 }
 0x3ea   : > { %1866 = vmatprep.subr.bf16.mxu1 %v1865_v32 }
 0x3ed   : > { %1868 = vmatpush3.bf16.msra.mxu1 %v1865_v32 }
 0x4b7   : > { %v1770_v18 = vpop.f32.mrb[6].mxu1 }
 0x4b8   : > { %v1191_v19 = vadd.f32 %v1770_v18, %v1621_v17  ;;  %v1185_v20 = vpop.f32.mrb[7].mxu1 }
 0x4b9   : > { %v1186_v21 = vadd.f32 %v1621_v17, %v1185_v20 }
 0x4ba   : > { %v1195_v23 = vadd.f32 %v1191_v19, %v2595_v34  ;;  %v1313_v34 = vld [vmem:[%s2719_s10 + $0x38] sm:$0xff] }
 0x4bb   : > { %v2615_v22 = vadd.f32 %v1186_v21, %v2591_v33  ;;  %v1312_v33 = vld [vmem:[%s2719_s10 + $0x30] sm:$0xff] }
 0x4bc   : > { %v1869_v35 = vpack.c.bf16 %v1313_v34, %v1312_v33 }
 0x4bd   : > { %1779 = vmatprep.mubr.msk.f32.mxu0 %vm578_vm0, %v2615_v22 }
 0x4be   : > { %1780 = vmatmul.mubr.msk.f32.vlgmr.msra.gmra.mrb[10].mxu0 %vm578_vm0, %v1195_v23  ;;  %1870 = vmatprep.subr.bf16.mxu1 %v1869_v35 }
 0x4bf   : > { %1872 = vmatpush3.bf16.msra.mxu1 %v1869_v35 }
 0x591   : > { %v1781_v37 = vpop.f32.mrb[10].mxu0 }
 0x592   : > { %v1285_v38 = vadd.f32 %v1781_v37, %v1624_v36  ;;  %v1279_v39 = vpop.f32.mrb[11].mxu0 }
 0x593   : > { %v1280_v40 = vadd.f32 %v1624_v36, %v1279_v39 }
 0x594   : > { %v1289_v41 = vmul.f32 %v1285_v38, %v1285_v38 }
 0x595   : > { %v1288_v42 = vmul.f32 %v1280_v40, %v1280_v40 }
 0x596   : > { %v1291_v43 = vmul.f32 %v1289_v41, %v1285_v38 }
 0x597   : > { %v1290_v44 = vmul.f32 %v1288_v42, %v1280_v40 }
 0x598   : > { %v1293_v45 = vmul.f32 0.044715, %v1291_v43 }
 0x599   : > { %v1292_v46 = vmul.f32 0.044715, %v1290_v44 }
 0x59a   : > { %v1295_v47 = vadd.f32 %v1293_v45, %v1285_v38 }
 0x59b   : > { %v1294_v48 = vadd.f32 %v1292_v46, %v1280_v40 }
 0x59c   : > { %v1297_v49 = vmul.f32 0.7978846, %v1295_v47 }
 0x59d   : > { %v1296_v50 = vmul.f32 0.7978846, %v1294_v48 }
 0x59e   : > { %1994 = vtanh.f32 %v1297_v49 }
 0x59f   : > { %1996 = vtanh.f32 %v1296_v50 }
 0x5a8   : > { %v1995_v51 = vpop.eup %1994 }
 0x5a9   : > { %v1997_v52 = vpop.eup %1996  ;;  %v1301_v53 = vadd.f32 1.0, %v1995_v51 }
 0x5aa   : > { %v1300_v54 = vadd.f32 1.0, %v1997_v52 }
 0x5ab   : > { %v1303_v55 = vmul.f32 0.5, %v1301_v53 }
 0x5ac   : > { %v1302_v56 = vmul.f32 0.5, %v1300_v54 }
 0x5ad   : > { %v1305_v58 = vmul.f32 %v1303_v55, %v1285_v38 }
 0x5ae   : > { %v1304_v57 = vmul.f32 %v1302_v56, %v1280_v40 }
 0x5b0   : > { %1798 = vmatprep.mubr.msk.f32.mxu1 %vm1321_vm1, %v1304_v57 }
 0x5b1   : > { %1799 = vmatmul.mubr.msk.f32.vlgmr.msra.gmra.mrb[8].mxu1 %vm1321_vm1, %v1305_v58 }
 0x684   : > { %v1800_v60 = vpop.f32.mrb[8].mxu1 }
 0x685   : > { %v1400_v61 = vadd.f32 %v1800_v60, %v1627_v59  ;;  %v1394_v62 = vpop.f32.mrb[9].mxu1 }
 0x686   : > { %v1395_v63 = vadd.f32 %v1627_v59, %v1394_v62 }
 0x687   : > { %v1404_v0 = vadd.f32 %v1400_v61, %v1195_v23 }
 0x688   : > { %v1403_v1 = vadd.f32 %v1395_v63, %v2615_v22 }
 0x689   : > { %1406 = vst.msk [vmem:[%s552_s11 + $0x8] sm:$0xff] %vm578_vm0, %v1404_v0 }
 0x68a   : > { %1405 = vst.msk [vmem:[%s552_s11] sm:$0xff] %vm578_vm0, %v1403_v1 }
 0x68b   : > { %2179 = shalt.err (!%p2176_p6)
}
 0x68c   : > { %s2180_s3 = scalar_lea.hbm %s2656_s23, 256  ;;  %s2184_s27 = scalar_lea.hbm %s2758_s19, 512 }
 0x68d   : > { %p2181_p7 = scmp.ne.s32.totalorder %s2656_s23, %s2180_s3  ;;  %p2185_p4 = scmp.lt.u32.totalorder %s2656_s23, %s2758_s19 }
 0x68e   : > { %p2186_p1 = scmp.lt.u32.totalorder %s2184_s27, %s2180_s3  ;;  %p2188_p8 = scmp.lt.u32.totalorder %s2180_s3, %s2656_s23 }
 0x68f   : > { %p2182_p9 = pnand %p2181_p7, %p2759_p10 }
 0x690   : > { %p2187_p13 = por %p2186_p1, %p2185_p4 }
 0x691   : > { %p2183_p12 = pneg %p2182_p9 }
 0x692   : > { %p2189_p11 = por %p2188_p8, %p2187_p13 }
 0x694   : > { %p2190_p0 = pnand %p2189_p11, %p2183_p12 }
 0x696   : > { %2193 = shalt.err (!%p2190_p0)
}
 0x697   : > { %s2272_s20 = smov 128   ;;  %s2273_s13 = smov 8  }
 0x698   : > { %1897 = dma.vmem_to_hbm [thread:$0]  (%p2759_p10), %s2658_s15, 256, %s2656_s23, %s2663_s24, %s2272_s20, %s2272_s20, %s2273_s13  }
 0x699 PF: > { %s2760_s11 = sld [smem:[#allocation23_spill]]  ;;  %s2761_s17 = sld [smem:[#allocation20_spill]] }
 0x69a   : > { %s2762_s28 = sld [smem:[#allocation26_spill]] }
 0x69f   : > { %p1934_p2 = scmp.ge.s32.totalorder %s2760_s11, 2  ;;  %s1438_s16 = sand.u32 1, %s2761_s17  }
 0x6a0   : > { %p2763_p3 = scmp.ne.s32.totalorder %s2762_s28, 0  ;;  %s1439_s18 = scalar_lea.sflag [#allocation5], %s1438_s16 }
 0x6a2   : > { %p1919_p5 = pnand %p1934_p2, %p2763_p3 }
 0x6a4   : > { %2235 = dma.done.wait (!%p1919_p5), %s1439_s18, 256  }
 0x6a5   : > { %2237 = vsyncadd (!%p1919_p5), %s1439_s18, 4294967040  ;;  %s29_s26 = sadd.s32 1, %s2760_s11   ;;  %s2764_s14 = sld [smem:[#allocation21_spill]] }
 0x6a6   : > { %p26_p6 = scmp.ge.s32.totalorder %s29_s26, 4   ;;  %s2765_s23 = sld [smem:[#allocation27_spill]] }
 0x6a7   : > { %s2766_s24 = sld [smem:[#allocation22_spill]]  ;;  %s2767_s25 = sld [smem:[#allocation24_spill]] }
 0x6a8   : > { %s2768_s21 = smov %s2244_s22  ;;  %28 = sbr.rel (!%p26_p6) target bundleno = 12 (0xc), region = 139 }
 0x6ab   : > { %s2769_s22 = smov %s2764_s14 }
 0x6af   :  { %1444 = vsyncpa [#allocation4], 1 }
 0x6b0   :  { %1446 = vsyncpa [#allocation4 + $0x1], 1 }
 0x6b1   :  { %1447 = vsyncpa [#allocation7], 1 }
 0x6b2   :  { %1448 = vsyncpa [#allocation10], 1 }
 0x6b3   :  { %1449 = vsyncpa [#allocation13], 1 }
 0x6b4   :  { %1450 = vsyncpa [#allocation5], 1 }
 0x6b5   :  { %1452 = vsyncpa [#allocation5 + $0x1], 1 }

</bundles_post_ra>
